<compile_context>
chip_gen: v5e
topology: v5e:2x2
jax: 0.10.0
libtpu: 0.0.40
codegen_flags: <defaults>
</compile_context>

<pallas_src>
import jax
import jax.numpy as jnp
from jax import lax
from jax.experimental import pallas as pl
from jax.experimental.pallas import tpu as pltpu


# ---------------------------------------------------------------------------
# sizing helpers
# ---------------------------------------------------------------------------

def _vmem_capacity_bytes():
    """Per-core VMEM capacity; conservative (v7x-sized) fallback if unknown."""
    try:
        info = pltpu.get_tpu_info()
        cap = int(getattr(info, "vmem_capacity_bytes", 0))
        if cap > 0:
            return cap
    except Exception:
        pass
    return 64 << 20


def _pick_t_chunk(T, BB, D, max_chunk_bytes=256 * 1024):
    """Sequence-axis chunk per inner-loop step; bounds the f32 temporaries."""
    if T <= 32:
        return T
    tc = max_chunk_bytes // max(1, BB * D * 4)
    tc = max(8, min(32, (tc // 8) * 8))   # 8..32, sublane-aligned scratch stores
    return min(tc, T)


def _pick_batch_block(B, T, D, Dc, in_itemsize, out_itemsize, budget_bytes):
    """Largest batch block BB dividing B whose total VMEM footprint (f32-aware:
    double-buffered M/x/w/output tiles + f32 scratch + chunked temporaries)
    fits the budget.  Only returns BB that is sublane-dense (multiple of 8, or
    16 for 2-byte inputs, 32 for 1-byte) or BB == B; never BB == 1 < B.
    Prefers a >=2-step grid so the parallel axis can shard across TensorCores
    (v7x has 2 TCs per chip)."""
    sub = 8 if in_itemsize >= 4 else (16 if in_itemsize == 2 else 32)
    cands = [bb for bb in range(B, 0, -1) if B % bb == 0 and bb % sub == 0]

    def footprint(bb):
        tc = _pick_t_chunk(T, bb, D)
        m_tiles = 2 * T * bb * D * in_itemsize            # double-buffered M block
        x_tiles = 2 * bb * Dc * in_itemsize
        w_tiles = 2 * Dc * D * in_itemsize
        out_tiles = 2 * bb * (D + T) * out_itemsize        # double-buffered outputs
        scratch = (T * bb + bb * D) * 4                     # score + pool scratch (f32)
        temps = (3 * tc * bb * D + 2 * T * bb + bb * D) * 4  # chunked f32 temporaries
        return m_tiles + x_tiles + w_tiles + out_tiles + scratch + temps

    feasible = [bb for bb in cands if footprint(bb) <= budget_bytes]
    if feasible:
        multi = [bb for bb in feasible if B // bb >= 2]
        if multi:
            return max(multi)      # largest fitting block that keeps >=2 grid steps
        return max(feasible)
    # Nothing fits the budget: smallest sublane-dense divisor, or the full batch
    # when B has no multiple-of-`sub` divisor (block dims equal to the array dims
    # are always tiling-legal).  Rely on the raised vmem limit in that case.
    return min(cands) if cands else B


# ---------------------------------------------------------------------------
# kernel
# ---------------------------------------------------------------------------

def _make_kernel(T, tc):
    n_full, rem = divmod(T, tc)

    def kernel(m_ref, x_ref, w_ref, pool_ref, alpha_ref, s_scr, pool_scr):
        # m_ref:     (T, BB, D)   memory block, native (seq, batch, dim) layout
        # x_ref:     (BB, Dc)     candidate block
        # w_ref:     (Dc, D)      transform weight (transposed nn.Linear weight)
        # pool_ref:  (BB, D)      attention-pooled output
        # alpha_ref: (BB, T)      attention weights (dense 2-D slab)
        # s_scr:     (T, BB) f32  scores -> alpha scratch
        # pool_scr:  (BB, D) f32  pool accumulator
        x = x_ref[...].astype(jnp.float32)
        w = w_ref[...].astype(jnp.float32)
        # candidate transform: the one legitimate dense MXU matmul
        xt = jnp.dot(x, w, preferred_element_type=jnp.float32)        # (BB, D)

        def score_chunk(t0, n):
            m_c = m_ref[pl.ds(t0, n), :, :].astype(jnp.float32)       # (n, BB, D)
            # s[t, b] = <M[t, b, :], xt[b, :]>  -- VPU multiply + lane reduce
            s_scr[pl.ds(t0, n), :] = jnp.sum(m_c * xt[None, :, :], axis=-1)

        def pool_chunk(t0, n):
            m_c = m_ref[pl.ds(t0, n), :, :].astype(jnp.float32)       # (n, BB, D)
            a_c = s_scr[pl.ds(t0, n), :]                              # (n, BB)
            pool_scr[...] += jnp.sum(a_c[:, :, None] * m_c, axis=0)   # (BB, D)

        # ---- pass 1: scores, chunked over T --------------------------------
        if n_full <= 8:
            for c in range(n_full):                                   # static unroll
                score_chunk(c * tc, tc)
        else:
            def body1(c, carry):
                score_chunk(pl.multiple_of(c * tc, tc), tc)
                return carry
            lax.fori_loop(0, n_full, body1, None)
        if rem:
            score_chunk(n_full * tc, rem)

        # ---- softmax over the sequence axis (T x BB: D-times smaller than M)
        s = s_scr[...]                                                # (T, BB)
        s_max = jnp.max(s, axis=0, keepdims=True)                     # (1, BB)
        e = jnp.exp(s - s_max)                                        # (T, BB)
        denom = jnp.sum(e, axis=0, keepdims=True)                     # (1, BB)
        s_scr[...] = e * pl.reciprocal(denom, approx=False)           # alpha

        # ---- pass 2: attn_pool[b, d] = sum_t alpha[t, b] * M[t, b, d] ------
        pool_scr[...] = jnp.zeros_like(pool_scr)
        if n_full <= 8:
            for c in range(n_full):
                pool_chunk(c * tc, tc)
        else:
            def body2(c, carry):
                pool_chunk(pl.multiple_of(c * tc, tc), tc)
                return carry
            lax.fori_loop(0, n_full, body2, None)
        if rem:
            pool_chunk(n_full * tc, rem)

        pool_ref[...] = pool_scr[...].astype(pool_ref.dtype)
        # alpha is only B*T elements; the (T, BB)->(BB, T) transpose is cheap XLU work
        alpha_ref[...] = s_scr[...].T.astype(alpha_ref.dtype)

    return kernel


# ---------------------------------------------------------------------------
# wrapper
# ---------------------------------------------------------------------------

def matching_attention(M, x, weight, *, batch_block=None):
    """
    M:      (seq_len, batch, mem_dim)   -- PyTorch layout, consumed as-is
    x:      (batch, cand_dim)
    weight: (mem_dim, cand_dim)         -- nn.Linear(cand_dim, mem_dim, bias=False).weight
    returns (attn_pool (batch, mem_dim), alpha (batch, 1, seq_len))
    """
    T, B, D = M.shape
    Bx, Dc = x.shape
    assert Bx == B and weight.shape == (D, Dc)

    in_itemsize = jnp.dtype(M.dtype).itemsize
    out_dtype = jnp.result_type(M.dtype, x.dtype, weight.dtype)
    out_itemsize = jnp.dtype(out_dtype).itemsize

    vmem_cap = _vmem_capacity_bytes()
    # ~45% of physical VMEM, capped at 48 MiB (safe on v7x's 64 MiB, generous on
    # v5e/v6e's 128 MiB); the explicit vmem_limit below lifts the scoped default.
    budget = min(int(vmem_cap * 0.45), 48 << 20)

    if batch_block is None:
        batch_block = _pick_batch_block(B, T, D, Dc, in_itemsize, out_itemsize, budget)
    BB = batch_block
    assert B % BB == 0

    tc = _pick_t_chunk(T, BB, D)
    kernel = _make_kernel(T, tc)

    # tiny one-off relayout of the weight (Dc, D); M itself is NOT transposed
    w_t = jnp.transpose(weight, (1, 0))

    grid_spec = pltpu.PrefetchScalarGridSpec(
        num_scalar_prefetch=0,
        grid=(B // BB,),
        in_specs=[
            # M in native (T, B, D) layout: block (T, BB, D), batch-block index b
            pl.BlockSpec((T, BB, D), lambda b: (0, b, 0)),
            # candidate block
            pl.BlockSpec((BB, Dc), lambda b: (b, 0)),
            # transform weight: same (small) block every step
            pl.BlockSpec((Dc, D), lambda b: (0, 0)),
        ],
        out_specs=[
            pl.BlockSpec((BB, D), lambda b: (b, 0)),   # attn_pool, dense slab
            pl.BlockSpec((BB, T), lambda b: (b, 0)),   # alpha, dense 2-D slab
        ],
        scratch_shapes=[
            pltpu.VMEM((T, BB), jnp.float32),          # scores -> alpha
            pltpu.VMEM((BB, D), jnp.float32),          # pool accumulator
        ],
    )

    cost = pl.CostEstimate(
        flops=4 * T * B * D + 2 * B * Dc * D,
        transcendentals=T * B,
        bytes_accessed=(T * B * D + B * Dc + Dc * D) * in_itemsize
                       + B * (D + T) * out_itemsize,
    )

    attn_pool, alpha2d = pl.pallas_call(
        kernel,
        out_shape=(
            jax.ShapeDtypeStruct((B, D), out_dtype),
            jax.ShapeDtypeStruct((B, T), out_dtype),
        ),
        grid_spec=grid_spec,
        compiler_params=pltpu.CompilerParams(
            dimension_semantics=("parallel",),
            vmem_limit_bytes=min(int(vmem_cap * 0.9), 112 << 20),
        ),
        cost_estimate=cost,
    )(M, x, w_t)

    # (B, T) -> (B, 1, T): metadata-only reshape in the wrapper
    return attn_pool, alpha2d[:, None, :]


# ---------------------------------------------------------------------------
# reference + test
# ---------------------------------------------------------------------------

def _reference(M, x, weight):
    # pure-JAX replica of MatchingAttention.forward (att_type='general', no mask)
    x_t = x @ weight.T                                   # (B, D)
    M_b = jnp.transpose(M, (1, 0, 2))                    # (B, T, D)
    scores = jnp.einsum("bd,btd->bt", x_t, M_b)          # (B, T)
    alpha = jax.nn.softmax(scores, axis=-1)              # (B, T)
    pool = jnp.einsum("bt,btd->bd", alpha, M_b)          # (B, D)
    return pool, alpha[:, None, :]


if __name__ == "__main__":
    key = jax.random.PRNGKey(0)
    seq_len, batch, mem_dim, cand_dim = 8, 2, 32, 24

    k_m, k_x, k_w = jax.random.split(key, 3)
    M = jax.random.normal(k_m, (seq_len, batch, mem_dim), dtype=jnp.float32)
    x = jax.random.normal(k_x, (batch, cand_dim), dtype=jnp.float32)
    # deterministic init of nn.Linear(cand_dim, mem_dim, bias=False).weight
    bound = 1.0 / (cand_dim ** 0.5)
    weight = jax.random.uniform(k_w, (mem_dim, cand_dim), dtype=jnp.float32,
                                minval=-bound, maxval=bound)

    attn_pool, alpha = matching_attention(M, x, weight)
    jax.block_until_ready((attn_pool, alpha))

    ref_pool, ref_alpha = _reference(M, x, weight)
    assert attn_pool.shape == (batch, mem_dim)
    assert alpha.shape == (batch, 1, seq_len)
    assert jnp.allclose(attn_pool, ref_pool, atol=1e-4, rtol=1e-4)
    assert jnp.allclose(alpha, ref_alpha, atol=1e-4, rtol=1e-4)

    print("KERNEL_OK")
</pallas_src>

<mosaic_0001>
module attributes {stable_mosaic.version = 11 : i64} {
  func.func @kernel(%arg0: i32, %arg1: memref<8x2x32xf32, #tpu.memory_space<vmem>>, %arg2: memref<2x24xf32, #tpu.memory_space<vmem>>, %arg3: memref<24x32xf32, #tpu.memory_space<vmem>>, %arg4: memref<2x32xf32, #tpu.memory_space<vmem>>, %arg5: memref<2x8xf32, #tpu.memory_space<vmem>>, %arg6: memref<8x2xf32, #tpu.memory_space<vmem>>, %arg7: memref<2x32xf32, #tpu.memory_space<vmem>>) attributes {dimension_semantics = [#tpu.dimension_semantics<parallel>], iteration_bounds = array<i64: 1>, scalar_prefetch = 0 : i64, scratch_operands = 2 : i64, tpu.core_type = #tpu.core_type<tc>, window_params = [{transform_indices = @transform_0, window_bounds = array<i64: 8, 2, 32>}, {transform_indices = @transform_1, window_bounds = array<i64: 2, 24>}, {pipeline_mode = #tpu.pipeline_mode<synchronous>, transform_indices = @transform_2, window_bounds = array<i64: 24, 32>}, {transform_indices = @transform_3, window_bounds = array<i64: 2, 32>}, {transform_indices = @transform_4, window_bounds = array<i64: 2, 8>}]} {
    %c0 = arith.constant 0 : index
    %c0_0 = arith.constant 0 : index
    %0 = vector.load %arg2[%c0, %c0_0] : memref<2x24xf32, #tpu.memory_space<vmem>>, vector<2x24xf32>
    %c0_1 = arith.constant 0 : index
    %c0_2 = arith.constant 0 : index
    %1 = vector.load %arg3[%c0_1, %c0_2] : memref<24x32xf32, #tpu.memory_space<vmem>>, vector<24x32xf32>
    %cst = arith.constant dense<0.000000e+00> : vector<2x32xf32>
    %2 = tpu.matmul %0, %1, %cst {dimension_numbers = #tpu.dot_dimension_numbers<[1], [0], [0], [1], [0, 0, 1, 1], [], []>} : vector<2x24xf32>, vector<24x32xf32>, vector<2x32xf32> -> vector<2x32xf32>
    %c0_3 = arith.constant 0 : index
    %c0_4 = arith.constant 0 : index
    %c0_5 = arith.constant 0 : index
    %3 = vector.load %arg1[%c0_3, %c0_4, %c0_5] : memref<8x2x32xf32, #tpu.memory_space<vmem>>, vector<8x2x32xf32>
    %4 = vector.shape_cast %2 : vector<2x32xf32> to vector<1x2x32xf32>
    %5 = vector.broadcast %4 : vector<1x2x32xf32> to vector<8x2x32xf32>
    %6 = arith.mulf %3, %5 : vector<8x2x32xf32>
    %cst_6 = arith.constant dense<0.000000e+00> : vector<8x2xf32>
    %7 = vector.multi_reduction <add>, %6, %cst_6 [2] : vector<8x2x32xf32> to vector<8x2xf32>
    %c0_7 = arith.constant 0 : index
    %c0_8 = arith.constant 0 : index
    %8 = vector.load %arg6[%c0_7, %c0_8] : memref<8x2xf32, #tpu.memory_space<vmem>>, vector<8x2xf32>
    tpu.vector_store %arg6[%c0_7, %c0_8], %7 {strides = array<i32>} : memref<8x2xf32, #tpu.memory_space<vmem>>, vector<8x2xf32>,
    %c0_9 = arith.constant 0 : index
    %c0_10 = arith.constant 0 : index
    %9 = vector.load %arg6[%c0_9, %c0_10] : memref<8x2xf32, #tpu.memory_space<vmem>>, vector<8x2xf32>
    %cst_11 = arith.constant dense<0xFF800000> : vector<2xf32>
    %10 = vector.multi_reduction <maximumf>, %9, %cst_11 [0] : vector<8x2xf32> to vector<2xf32>
    %11 = vector.shape_cast %10 : vector<2xf32> to vector<1x2xf32>
    %12 = vector.broadcast %11 : vector<1x2xf32> to vector<8x2xf32>
    %13 = arith.subf %9, %12 : vector<8x2xf32>
    %14 = math.exp %13 : vector<8x2xf32>
    %cst_12 = arith.constant dense<0.000000e+00> : vector<2xf32>
    %15 = vector.multi_reduction <add>, %14, %cst_12 [0] : vector<8x2xf32> to vector<2xf32>
    %16 = vector.shape_cast %15 : vector<2xf32> to vector<1x2xf32>
    %17 = tpu.reciprocal %16 : vector<1x2xf32> -> vector<1x2xf32>
    %18 = vector.broadcast %17 : vector<1x2xf32> to vector<8x2xf32>
    %19 = arith.mulf %14, %18 : vector<8x2xf32>
    %c0_13 = arith.constant 0 : index
    %c0_14 = arith.constant 0 : index
    %20 = vector.load %arg6[%c0_13, %c0_14] : memref<8x2xf32, #tpu.memory_space<vmem>>, vector<8x2xf32>
    tpu.vector_store %arg6[%c0_13, %c0_14], %19 {strides = array<i32>} : memref<8x2xf32, #tpu.memory_space<vmem>>, vector<8x2xf32>,
    %cst_15 = arith.constant 0.000000e+00 : f32
    %21 = vector.broadcast %cst_15 : f32 to vector<2x32xf32>
    %c0_16 = arith.constant 0 : index
    %c0_17 = arith.constant 0 : index
    %22 = vector.load %arg7[%c0_16, %c0_17] : memref<2x32xf32, #tpu.memory_space<vmem>>, vector<2x32xf32>
    tpu.vector_store %arg7[%c0_16, %c0_17], %21 {strides = array<i32>} : memref<2x32xf32, #tpu.memory_space<vmem>>, vector<2x32xf32>,
    %c0_18 = arith.constant 0 : index
    %c0_19 = arith.constant 0 : index
    %c0_20 = arith.constant 0 : index
    %23 = vector.load %arg1[%c0_18, %c0_19, %c0_20] : memref<8x2x32xf32, #tpu.memory_space<vmem>>, vector<8x2x32xf32>
    %c0_21 = arith.constant 0 : index
    %c0_22 = arith.constant 0 : index
    %24 = vector.load %arg6[%c0_21, %c0_22] : memref<8x2xf32, #tpu.memory_space<vmem>>, vector<8x2xf32>
    %c0_23 = arith.constant 0 : index
    %c0_24 = arith.constant 0 : index
    %25 = vector.load %arg7[%c0_23, %c0_24] : memref<2x32xf32, #tpu.memory_space<vmem>>, vector<2x32xf32>
    %26 = vector.shape_cast %24 : vector<8x2xf32> to vector<8x2x1xf32>
    %27 = vector.broadcast %26 : vector<8x2x1xf32> to vector<8x2x32xf32>
    %28 = arith.mulf %27, %23 : vector<8x2x32xf32>
    %cst_25 = arith.constant dense<0.000000e+00> : vector<2x32xf32>
    %29 = vector.multi_reduction <add>, %28, %cst_25 [0] : vector<8x2x32xf32> to vector<2x32xf32>
    %30 = arith.addf %25, %29 : vector<2x32xf32>
    %c0_26 = arith.constant 0 : index
    %c0_27 = arith.constant 0 : index
    %31 = vector.load %arg7[%c0_26, %c0_27] : memref<2x32xf32, #tpu.memory_space<vmem>>, vector<2x32xf32>
    tpu.vector_store %arg7[%c0_26, %c0_27], %30 {strides = array<i32>} : memref<2x32xf32, #tpu.memory_space<vmem>>, vector<2x32xf32>,
    %c0_28 = arith.constant 0 : index
    %c0_29 = arith.constant 0 : index
    %32 = vector.load %arg7[%c0_28, %c0_29] : memref<2x32xf32, #tpu.memory_space<vmem>>, vector<2x32xf32>
    %c0_30 = arith.constant 0 : index
    %c0_31 = arith.constant 0 : index
    %33 = vector.load %arg4[%c0_30, %c0_31] : memref<2x32xf32, #tpu.memory_space<vmem>>, vector<2x32xf32>
    tpu.vector_store %arg4[%c0_30, %c0_31], %32 {strides = array<i32>} : memref<2x32xf32, #tpu.memory_space<vmem>>, vector<2x32xf32>,
    %c0_32 = arith.constant 0 : index
    %c0_33 = arith.constant 0 : index
    %34 = vector.load %arg6[%c0_32, %c0_33] : memref<8x2xf32, #tpu.memory_space<vmem>>, vector<8x2xf32>
    %35 = tpu.transpose %34, [1, 0] : vector<8x2xf32> -> vector<2x8xf32>
    %c0_34 = arith.constant 0 : index
    %c0_35 = arith.constant 0 : index
    %36 = vector.load %arg5[%c0_34, %c0_35] : memref<2x8xf32, #tpu.memory_space<vmem>>, vector<2x8xf32>
    tpu.vector_store %arg5[%c0_34, %c0_35], %35 {strides = array<i32>} : memref<2x8xf32, #tpu.memory_space<vmem>>, vector<2x8xf32>,
    return
  }
  func.func @transform_0(%arg0: i32) -> (i32, i32, i32) {
    %c0_i32 = arith.constant 0 : i32
    %c0_i32_0 = arith.constant 0 : i32
    %c0_i32_1 = arith.constant 0 : i32
    return %c0_i32, %arg0, %c0_i32_0 : i32, i32, i32
  }
  func.func @transform_1(%arg0: i32) -> (i32, i32) {
    %c0_i32 = arith.constant 0 : i32
    %c0_i32_0 = arith.constant 0 : i32
    return %arg0, %c0_i32 : i32, i32
  }
  func.func @transform_2(%arg0: i32) -> (i32, i32) {
    %c0_i32 = arith.constant 0 : i32
    %c0_i32_0 = arith.constant 0 : i32
    %c0_i32_1 = arith.constant 0 : i32
    return %c0_i32, %c0_i32_0 : i32, i32
  }
  func.func @transform_3(%arg0: i32) -> (i32, i32) {
    %c0_i32 = arith.constant 0 : i32
    %c0_i32_0 = arith.constant 0 : i32
    return %arg0, %c0_i32 : i32, i32
  }
  func.func @transform_4(%arg0: i32) -> (i32, i32) {
    %c0_i32 = arith.constant 0 : i32
    %c0_i32_0 = arith.constant 0 : i32
    return %arg0, %c0_i32 : i32, i32
  }
}

</mosaic_0001>

<bundles_post_ra>
// kernel: tpu_custom_call.1
= control target key start
LH: loop header
LB: loop body
LE: loop exit
PB: predicated region body
PF: predicated region fallthrough
CT: control target
= control target key end

     0   :  { %10 = vsyncpa [#allocation5], 0  ;;  %s583_s0 = inlined_call_operand.hbm [shape: f32[8,2,32], index: 0, kind: input, shape index: {}]   ;;  %s584_s1 = inlined_call_operand.hbm [shape: f32[2,24], index: 1, kind: input, shape index: {}]   ;;  %s585_s2 = inlined_call_operand.hbm [shape: f32[24,32], index: 2, kind: input, shape index: {}]   ;;  %s586_s3 = inlined_call_operand.hbm [shape: f32[2,32], index: 3, kind: output, shape index: {0}]   ;;  %s587_s4 = inlined_call_operand.hbm [shape: f32[2,8], index: 4, kind: output, shape index: {1}]  }
   0x1   :  { %11 = vsyncpa [#allocation8], 0 }
   0x2   :  { %12 = vsyncpa [#allocation6], 0  ;;  %s32_s17 = sshll.u32 %s584_s1, 4  ;;  %s33_s17 = int_to_ptr.hbm [resolvable:$true] %s32_s17 }
   0x3   :  { %13 = vsyncpa [#allocation12], 0  ;;  %s510_s18 = smov [#allocation7]   ;;  %s18_s22 = sshll.u32 %s583_s0, 4  ;;  %s19_s22 = int_to_ptr.hbm [resolvable:$true] %s18_s22 }
   0x4   :  { %s34_s19 = sshll.u32 %s510_s18, 4  ;;  %s511_s23 = smov [#allocation4]   ;;  %s35_s19 = int_to_ptr.vmem [resolvable:$true] %s34_s19 }
   0x5   :  { %37 = dma.hbm_to_vmem [thread:$0]  %s33_s17, 32, %s35_s19, [#allocation8]  }
   0x6   :  { %s20_s24 = sshll.u32 %s511_s23, 4  ;;  %s512_s25 = smov 32   ;;  %s21_s24 = int_to_ptr.vmem [resolvable:$true] %s20_s24 }
   0x7   :  { %s513_s26 = smov 2   ;;  %s42_s1 = sshll.u32 %s585_s2, 4  ;;  %s43_s1 = int_to_ptr.hbm [resolvable:$true] %s42_s1 }
   0x8   :  { %26 = dma.hbm_to_vmem [thread:$0]  %s19_s22, 256, %s21_s24, [#allocation5], %s512_s25, %s512_s25, %s513_s26  }
   0x9   :  { %s514_s29 = smov [#allocation9]   ;;  %s515_s5 = smov 128  }
   0xa   :  { %s44_s30 = sshll.u32 %s514_s29, 4  ;;  %s516_s6 = smov 8   ;;  %s45_s30 = int_to_ptr.vmem [resolvable:$true] %s44_s30 }
   0xb   :  { %50 = dma.hbm_to_vmem [thread:$0]  %s43_s1, 384, %s45_s30, [#allocation8], %s515_s5, %s515_s5, %s516_s6  }
   0xc   :  { %502 = dma.done.wait [#allocation5], 256  }
   0xd   :  { %503 = vsyncadd [#allocation5], 4294967040 }
   0xe   :  { %504 = dma.done.wait [#allocation8], 416  }
   0xf   :  { %505 = vsyncadd [#allocation8], 4294966880  ;;  %v66_v0 = vld [vmem:[#allocation9 + $0x10] sm:$0xff]  ;;  %v65_v1 = vld [vmem:[#allocation9 + $0x8] sm:$0xff]  ;;  %vm67_vm0 = vcmask 195584   ;;  %vm107_vm1 = vcmask 254976   ;;  %v140_v31 = vlaneseq }
  0x10   :  { %84 = vmatpush.msra.mxu0 %v66_v0  ;;  %v64_v2 = vld [vmem:[#allocation9] sm:$0xff]  ;;  %v63_v3 = vld [vmem:[#allocation7] sm:$0x3]  ;;  %v95_v4 = vld [vmem:[#allocation4 + $0x8] sm:$0x3]  ;;  %vm150_vm2 = vcmask 1041409  }
  0x11   :  { %v93_v5 = vld [vmem:[#allocation4 + $0x4] sm:$0x3]  ;;  %v91_v6 = vld [vmem:[#allocation4] sm:$0x3]  ;;  %v96_v14 = vld [vmem:[#allocation4 + $0xa] sm:$0x3] }
  0x12   :  { %85 = vmatpush.msra.mxu0 %v65_v1  ;;  %v94_v15 = vld [vmem:[#allocation4 + $0x6] sm:$0x3]  ;;  %v92_v16 = vld [vmem:[#allocation4 + $0x2] sm:$0x3]  ;;  %v98_v23 = vld [vmem:[#allocation4 + $0xe] sm:$0x3] }
  0x13   :  { %v97_v24 = vld [vmem:[#allocation4 + $0xc] sm:$0x3]  ;;  %v141_v33 = vand.u32 127, %v140_v31  ;;  %vm152_vm3 = vcmask 1042434   ;;  %vm154_vm4 = vcmask 1043459   ;;  %vm156_vm5 = vcmask 1044484  }
  0x14   :  { %86 = vmatpush.msra.mxu0 %v64_v2  ;;  %vm158_vm6 = vcmask 1045509   ;;  %vm160_vm7 = vcmask 1046534   ;;  %vm162_vm8 = vcmask 1047559   ;;  %vm165_vm9 = vcmask 15360   ;;  %s518_s0 = smov [#allocation10]   ;;  %s337_s9 = sshll.u32 %s586_s3, 4  ;;  %s338_s9 = int_to_ptr.hbm [resolvable:$true] %s337_s9 }
  0x15   :  { %364 = vmatmul.msk.f32.vlgmr.msra.gmra.mxu0 %vm67_vm0, %v63_v3  ;;  %v214_v2 = vshrl.u32 %v140_v31, 7  ;;  %s335_s2 = sshll.u32 %s518_s0, 4  ;;  %s519_s10 = smov [#allocation11]   ;;  %vm328_vm14 = vcmask 58368   ;;  %s336_s2 = int_to_ptr.vmem [resolvable:$true] %s335_s2 }
  0x16   :  { %s346_s11 = sshll.u32 %s519_s10, 4  ;;  %s348_s14 = sshll.u32 %s587_s4, 4  ;;  %s347_s11 = int_to_ptr.vmem [resolvable:$true] %s346_s11  ;;  %s349_s14 = int_to_ptr.hbm [resolvable:$true] %s348_s14 }
  0x17   :  { %377 = vset.pattern.permute.xlu1 %v214_v2  ;;  %376 = vset.pattern.permute.xlu0 %v214_v2 }
  0x18   :  { %375 = vset.pattern.permute.xlu2 %v214_v2 }
  0x92   :  { %v88_v7 = vpop.f32.mrf.mxu0 }
  0x93   :  { %v103_v8 = vmul.f32 %v95_v4, %v88_v7  ;;  %v101_v9 = vmul.f32 %v93_v5, %v88_v7  ;;  %v99_v10 = vmul.f32 %v91_v6, %v88_v7  ;;  %v104_v17 = vmul.f32 %v96_v14, %v88_v7 }
  0x94   :  { %v102_v18 = vmul.f32 %v94_v15, %v88_v7  ;;  %v100_v19 = vmul.f32 %v92_v16, %v88_v7  ;;  %v106_v25 = vmul.f32 %v98_v23, %v88_v7  ;;  %v105_v26 = vmul.f32 %v97_v24, %v88_v7 }
  0x95   :  { %v120_v11 = vsel %vm107_vm1, %v103_v8, 0.0  ;;  %v114_v12 = vsel %vm107_vm1, %v101_v9, 0.0  ;;  %v108_v13 = vsel %vm107_vm1, %v99_v10, 0.0  ;;  %v123_v20 = vsel %vm107_vm1, %v104_v17, 0.0 }
  0x96   :  { %121 = vadd.xlane.f32.xlu2 %v120_v11  ;;  %115 = vadd.xlane.f32.xlu1 %v114_v12  ;;  %v117_v21 = vsel %vm107_vm1, %v102_v18, 0.0  ;;  %v111_v22 = vsel %vm107_vm1, %v100_v19, 0.0  ;;  %v129_v27 = vsel %vm107_vm1, %v106_v25, 0.0  ;;  %v126_v28 = vsel %vm107_vm1, %v105_v26, 0.0 }
  0x97   :  { %109 = vadd.xlane.f32.xlu0 %v108_v13 }
  0x9e   :  { %124 = vadd.xlane.f32.xlu2 %v123_v20  ;;  %118 = vadd.xlane.f32.xlu1 %v117_v21 }
  0x9f   :  { %112 = vadd.xlane.f32.xlu0 %v111_v22 }
  0xa6   :  { %130 = vadd.xlane.f32.xlu1 %v129_v27 }
  0xa7   :  { %127 = vadd.xlane.f32.xlu0 %v126_v28 }
 0x109   :  { %v116_v29 = vpop.xlane.xlu1 %115  ;;  %v122_v32 = vpop.xlane.xlu2 %121 }
 0x10a   :  { %v110_v30 = vpop.xlane.xlu0 %109  ;;  %v144_v38 = vperm.slane %v116_v29, %v141_v33  ;;  %v146_v42 = vperm.slane %v122_v32, %v141_v33  ;;  %v202_v32 = vld [vmem:[#allocation4] sm:$0x3] }
 0x10b   :  { %v142_v36 = vperm.slane %v110_v30, %v141_v33  ;;  %v517_v30 = vmov 0.0  }
 0x10c   :  { %201 = vst.msk [vmem:[#allocation3] sm:$0x3] %vm107_vm1, %v517_v30 }
 0x111   :  { %v119_v34 = vpop.xlane.xlu1 %118  ;;  %v125_v43 = vpop.xlane.xlu2 %124 }
 0x112   :  { %v113_v35 = vpop.xlane.xlu0 %112  ;;  %v145_v39 = vperm.slane %v119_v34, %v141_v33  ;;  %v147_v47 = vperm.slane %v125_v43, %v141_v33  ;;  %v203_v34 = vld [vmem:[#allocation4 + $0x2] sm:$0x3] }
 0x113   :  { %v143_v37 = vperm.slane %v113_v35, %v141_v33 }
 0x115   :  { %v151_v40 = vsel %vm150_vm2, %v143_v37, %v142_v36  ;;  %v205_v37 = vld [vmem:[#allocation4 + $0x6] sm:$0x3] }
 0x116   :  { %v153_v41 = vsel %vm152_vm3, %v144_v38, %v151_v40 }
 0x117   :  { %v155_v44 = vsel %vm154_vm4, %v145_v39, %v153_v41 }
 0x118   :  { %v157_v46 = vsel %vm156_vm5, %v146_v42, %v155_v44  ;;  %v206_v42 = vld [vmem:[#allocation4 + $0x8] sm:$0x3] }
 0x119   :  { %v131_v45 = vpop.xlane.xlu1 %130  ;;  %v159_v51 = vsel %vm158_vm6, %v147_v47, %v157_v46 }
 0x11a   :  { %v149_v48 = vperm.slane %v131_v45, %v141_v33  ;;  %v128_v49 = vpop.xlane.xlu0 %127 }
 0x11b   :  { %v148_v50 = vperm.slane %v128_v49, %v141_v33  ;;  %v204_v33 = vld [vmem:[#allocation4 + $0x4] sm:$0x3] }
 0x11d   :  { %v161_v52 = vsel %vm160_vm7, %v148_v50, %v159_v51  ;;  %v207_v50 = vld [vmem:[#allocation4 + $0xa] sm:$0x3] }
 0x11e   :  { %v163_v53 = vsel %vm162_vm8, %v149_v48, %v161_v52 }
 0x11f   :  { %166 = vst.msk [vmem:[#allocation2] sm:$0xff] %vm165_vm9, %v163_v53 }
 0x126   :  { %v167_v54 = vld [vmem:[#allocation2] sm:$0xff] }
 0x127   :  { %v168_v55 = vsel %vm165_vm9, %v167_v54, -inf }
 0x128   :  { %v169_v56 = vrot.slane %v168_v55, 4 }
 0x12a   :  { %v170_v57 = vmax.f32 %v168_v55, %v169_v56  ;;  %v208_v56 = vld [vmem:[#allocation4 + $0xc] sm:$0x3] }
 0x12c   :  { %v171_v58 = vrot.slane %v170_v57, 2 }
 0x12e   :  { %v172_v59 = vmax.f32 %v170_v57, %v171_v58 }
 0x130   :  { %v173_v60 = vrot.slane %v172_v59, 1 }
 0x132   :  { %v174_v61 = vmax.f32 %v172_v59, %v173_v60 }
 0x134   :  { %v175_v62 = vsub.f32 %v167_v54, %v174_v61 }
 0x136   :  { %v176_v63 = vmul.f32 1.442695, %v175_v62  ;;  %v209_v62 = vld [vmem:[#allocation4 + $0xe] sm:$0x3] }
 0x138   :  { %378 = vpow2.f32 %v176_v63 }
 0x13e   :  { %v379_v0 = vpop.eup %378 }
 0x13f   :  { %v178_v1 = vsel %vm165_vm9, %v379_v0, 0.0 }
 0x140   :  { %v179_v3 = vrot.slane %v178_v1, 4 }
 0x142   :  { %v180_v4 = vadd.f32 %v179_v3, %v178_v1  ;;  %v211_v3 = vld [vmem:[#allocation3] sm:$0x3] }
 0x144   :  { %v181_v5 = vrot.slane %v180_v4, 2 }
 0x146   :  { %v182_v6 = vadd.f32 %v181_v5, %v180_v4 }
 0x148   :  { %v183_v7 = vrot.slane %v182_v6, 1 }
 0x14a   :  { %v184_v8 = vadd.f32 %v183_v7, %v182_v6 }
 0x14c   :  { %380 = vrcp.f32 %v184_v8  ;;  %v196_v12 = vand.u32 2147483648, %v184_v8  ;;  %v194_v14 = vand.u32 2147483647, %v184_v8  ;;  %vm190_vm11 = vweird.f32 %v184_v8 }
 0x14e   :  { %v197_v16 = vor.u32 1.1754944e-38, %v196_v12  ;;  %vm195_vm13 = vcmp.eq.f32.partialorder %v194_v14, 8.507059e+37 }
 0x152   :  { %v381_v9 = vpop.eup %380 }
 0x153   :  { %v186_v10 = vmul.f32 %v381_v9, %v184_v8  ;;  %vm191_vm10 = vweird.f32 %v381_v9 }
 0x154   :  { %vm192_vm12 = vmor %vm190_vm11, %vm191_vm10 }
 0x155   :  { %v187_v11 = vsub.f32 1.0, %v186_v10 }
 0x157   :  { %v188_v13 = vmul.f32 %v381_v9, %v187_v11 }
 0x159   :  { %v189_v15 = vadd.f32 %v381_v9, %v188_v13 }
 0x15b   :  { %v193_v17 = vsel %vm192_vm12, %v381_v9, %v189_v15 }
 0x15c   :  { %v198_v18 = vsel %vm195_vm13, %v197_v16, %v193_v17 }
 0x15d   :  { %v199_v19 = vmul.f32 %v379_v0, %v198_v18 }
 0x15f   :  { %200 = vst.msk [vmem:[#allocation2] sm:$0xff] %vm165_vm9, %v199_v19 }
 0x166   :  { %v210_v20 = vld [vmem:[#allocation2] sm:$0xff] }
 0x167   :  { %v226_v21 = vperm.slane %v210_v20, 2  ;;  %v219_v22 = vperm.slane %v210_v20, 1  ;;  %v212_v23 = vperm.slane %v210_v20, 0  ;;  %v247_v24 = vperm.slane %v210_v20, 5 }
 0x168   :  { %v233_v25 = vperm.slane %v210_v20, 3  ;;  %v261_v26 = vperm.slane %v210_v20, 7  ;;  %v240_v27 = vperm.slane %v210_v20, 4  ;;  %v254_v28 = vperm.slane %v210_v20, 6 }
 0x169   :  { %231 = vperm.xlu1 %377, %v226_v21   ;;  %224 = vperm.xlu0 %376, %v219_v22  }
 0x16a   :  { %217 = vperm.xlu2 %375, %v212_v23  }
 0x171   :  { %252 = vperm.xlu1 %377, %v247_v24  }
 0x172   :  { %238 = vperm.xlu2 %375, %v233_v25  }
 0x179   :  { %266 = vperm.xlu1 %377, %v261_v26  }
 0x17a   :  { %245 = vperm.xlu2 %375, %v240_v27  }
 0x182   :  { %259 = vperm.xlu2 %375, %v254_v28  }
 0x18b   :  { %296 = vxpose.xlu0.b32.start.end [1/1] (short) (narrow) %v210_v20, 8 }
 0x1c4   :  { %v218_v29 = vpop.permute.xlu2 %217 }
 0x1c5   :  { %v268_v35 = vmul.f32 %v218_v29, %v202_v32 }
 0x1c7   :  { %v276_v43 = vsel %vm107_vm1, %v268_v35, 0.0 }
 0x1cc   :  { %v239_v31 = vpop.permute.xlu2 %238 }
 0x1cd   :  { %v271_v44 = vmul.f32 %v239_v31, %v205_v37 }
 0x1cf   :  { %v281_v51 = vsel %vm107_vm1, %v271_v44, 0.0 }
 0x1d4   :  { %v246_v36 = vpop.permute.xlu2 %245 }
 0x1d5   :  { %v272_v47 = vmul.f32 %v246_v36, %v206_v42 }
 0x1d7   :  { %v283_v54 = vsel %vm107_vm1, %v272_v47, 0.0 }
 0x1db   :  { %v232_v38 = vpop.permute.xlu1 %231  ;;  %v225_v39 = vpop.permute.xlu0 %224 }
 0x1dc   :  { %v270_v40 = vmul.f32 %v232_v38, %v204_v33  ;;  %v269_v41 = vmul.f32 %v225_v39, %v203_v34  ;;  %v260_v57 = vpop.permute.xlu2 %259 }
 0x1dd   :  { %v274_v60 = vmul.f32 %v260_v57, %v208_v56 }
 0x1de   :  { %v277_v45 = vsel %vm107_vm1, %v269_v41, 0.0  ;;  %v279_v48 = vsel %vm107_vm1, %v270_v40, 0.0 }
 0x1df   :  { %v278_v46 = vadd.f32 %v277_v45, %v276_v43  ;;  %v287_v0 = vsel %vm107_vm1, %v274_v60, 0.0 }
 0x1e1   :  { %v280_v49 = vadd.f32 %v279_v48, %v278_v46 }
 0x1e3   :  { %v253_v52 = vpop.permute.xlu1 %252  ;;  %v282_v53 = vadd.f32 %v281_v51, %v280_v49 }
 0x1e4   :  { %v273_v55 = vmul.f32 %v253_v52, %v207_v50 }
 0x1e5   :  { %v284_v58 = vadd.f32 %v283_v54, %v282_v53 }
 0x1e6   :  { %v285_v59 = vsel %vm107_vm1, %v273_v55, 0.0 }
 0x1e7   :  { %v286_v61 = vadd.f32 %v285_v59, %v284_v58 }
 0x1e9   :  { %v288_v2 = vadd.f32 %v287_v0, %v286_v61 }
 0x1eb   :  { %v267_v63 = vpop.permute.xlu1 %266 }
 0x1ec   :  { %v275_v1 = vmul.f32 %v267_v63, %v209_v62 }
 0x1ee   :  { %v289_v4 = vsel %vm107_vm1, %v275_v1, 0.0 }
 0x1ef   :  { %v290_v5 = vadd.f32 %v289_v4, %v288_v2 }
 0x1f1   :  { %v291_v6 = vadd.f32 %v290_v5, %v211_v3 }
 0x1f3   :  { %292 = vst.msk [vmem:[#allocation3] sm:$0x3] %vm107_vm1, %v291_v6 }
 0x1fa   :  { %v293_v7 = vld [vmem:[#allocation3] sm:$0x3] }
 0x1fb   :  { %294 = vst.msk [vmem:[#allocation10] sm:$0x3] %vm107_vm1, %v293_v7 }
 0x1fc   :  { %340 = dma.vmem_to_hbm [thread:$0]  %s336_s2, 32, %s338_s9, [#allocation6]  }
 0x22f   :  { %v312_v8 = vpop.trf.xlu0 }
 0x230   :  { %329 = vst.msk [vmem:[#allocation11] sm:$0x3] %vm328_vm14, %v312_v8 }
 0x231   :  { %351 = dma.vmem_to_hbm [thread:$0]  %s347_s11, 32, %s349_s14, [#allocation12]  }
 0x232   :  { %506 = dma.done.wait [#allocation6], 32  }
 0x233   :  { %507 = vsyncadd [#allocation6], 4294967264 }
 0x234   :  { %508 = dma.done.wait [#allocation12], 32  }
 0x235   :  { %509 = vsyncadd [#allocation12], 4294967264 }
 0x236   :  { %360 = vsyncpa [#allocation5], 1 }
 0x237   :  { %361 = vsyncpa [#allocation8], 1 }
 0x238   :  { %362 = vsyncpa [#allocation6], 1 }
 0x239   :  { %363 = vsyncpa [#allocation12], 1 }

</bundles_post_ra>
